<compile_context>
chip_gen: v7x
topology: tpu7x:2x2x1
jax: 0.10.0
libtpu: 0.0.40
codegen_flags: <defaults>
</compile_context>

<pallas_src>
import functools

import jax
import jax.numpy as jnp
from jax.experimental import pallas as pl
from jax.experimental.pallas import tpu as pltpu


def _round_up(x, multiple):
    return (x + multiple - 1) // multiple * multiple


def _vmem_capacity_bytes():
    try:
        return int(pltpu.get_tpu_info().vmem_capacity_bytes)
    except Exception:                      # emulator / unknown part: be safe
        return 64 * 1024 * 1024            # v7x per-TC VMEM


def _choose_h_out_block(h_out, *, prefer_256=True):
    """Output lane width: lane-dense only when the padding cost is modest.

    Lane-dense (multiple-of-128) stores beat masked vst.msk, but padding is
    paid for with extra output HBM writes plus a post-slice pass over the
    whole output, so only pad when the write amplification is small.
    """
    if prefer_256 and h_out >= 256:
        h256 = _round_up(h_out, 256)
        if 8 * h256 <= 9 * h_out:          # <= 12.5% extra N-axis work
            return h256                    # full v6e/v7x MXU tiles
    h128 = _round_up(h_out, 128)
    if 4 * h128 <= 5 * h_out:              # <= 25% extra output writes
        return h128
    return h_out                           # unpadded: masked vst, no slice


def prepare_seqwise_linear_params(weight, bias, *, compute_dtype=jnp.bfloat16,
                                  prefer_256=True):
    """One-time parameter prep (call once, outside the hot path).

    weight: (H_out, H_in)  PyTorch nn.Linear layout
    bias:   (H_out,)
    Returns (w_t, b2d, h_out):
      w_t: (H_in, H_out_p) in compute_dtype (pre-transposed, lane-padded)
      b2d: (1, H_out_p)    float32
    """
    h_out, h_in = weight.shape
    h_out_p = _choose_h_out_block(h_out, prefer_256=prefer_256)
    w_t = weight.T.astype(compute_dtype)            # (H_in, H_out)
    b2d = bias.astype(jnp.float32).reshape(1, h_out)
    if h_out_p != h_out:
        w_t = jnp.pad(w_t, ((0, 0), (0, h_out_p - h_out)))
        b2d = jnp.pad(b2d, ((0, 0), (0, h_out_p - h_out)))
    return w_t, b2d, h_out


def _seqwise_linear_kernel(x_ref, w_ref, b_ref, o_ref, *, compute_dtype):
    # x_ref: (TM, H_in)       row tile of flattened input, native dtype
    # w_ref: (H_in, H_out_p)  pre-transposed weight (compute_dtype), resident
    # b_ref: (1, H_out_p)     bias (f32), resident
    # o_ref: (TM, H_out_p)    output tile
    x = x_ref[...].astype(compute_dtype)            # VPU cast, hidden under DMA
    acc = jnp.dot(x, w_ref[...], preferred_element_type=jnp.float32)
    o_ref[...] = (acc + b_ref[...]).astype(o_ref.dtype)


def sequence_wise_linear(x, w_t, b2d, h_out, *, block_m=None, out_dtype=None,
                         keep_padded=False):
    """SequenceWise(nn.Linear) forward.

    x:     (T, N, H_in)     time-major input (any float dtype)
    w_t:   (H_in, H_out_p)  from prepare_seqwise_linear_params
    b2d:   (1, H_out_p)     from prepare_seqwise_linear_params
    h_out: true (unpadded) output width
    Returns (T, N, H_out) in out_dtype (default x.dtype), or (T, N, H_out_p)
    if keep_padded=True (lets a downstream consumer skip the slicing pass).
    """
    t, n, h_in = x.shape
    h_in_w, h_out_p = w_t.shape
    assert h_in == h_in_w, "weight H_in does not match input H_in"
    m = t * n
    out_dtype = x.dtype if out_dtype is None else out_dtype
    compute_dtype = w_t.dtype

    x_itemsize = jnp.dtype(x.dtype).itemsize
    w_itemsize = jnp.dtype(compute_dtype).itemsize
    out_itemsize = jnp.dtype(out_dtype).itemsize

    vmem_cap = _vmem_capacity_bytes()
    vmem_budget = int(0.75 * vmem_cap)   # ~96 MiB on 128 MiB parts, ~48 MiB on v7x

    # Row tile: multiple of 8 (sublane); bigger tiles amortize the ~0.35 us
    # per-grid-step overhead on the 128 MiB-VMEM generations.
    if block_m is None:
        block_m = 1024 if vmem_cap >= (100 << 20) else 512
    tm = min(block_m, _round_up(m, 8))
    # Guarantee >= 2 row tiles for large M so the "parallel" grid axis can be
    # sharded across both v7x TensorCores (no effect on single-TC v5e/v6e).
    if m >= 512 and pl.cdiv(m, tm) < 2:
        tm = _round_up(pl.cdiv(m, 2), 8)

    def tile_vmem_bytes(tm_):
        return (2 * tm_ * h_in * x_itemsize          # x tiles (double-buffered)
                + 2 * tm_ * h_out_p * out_itemsize   # out tiles (double-buffered)
                + 2 * h_out_p * h_in * w_itemsize    # W (2x: default buffering)
                + 2 * h_out_p * 4)                   # bias
    # TODO(synk): mark W/bias single-buffered (pipeline_mode=pl.Buffered(1))
    # once verified on all targets; until then they are counted at 2x above.

    while tm > 64 and tile_vmem_bytes(tm) > vmem_budget:
        tm = max(64, _round_up(tm // 2, 8))

    grid = (pl.cdiv(m, tm),)             # ragged last tile handled by Pallas

    # Scheduling hint for XLA around the custom call.
    cost = pl.CostEstimate(
        flops=2 * m * h_in * h_out_p,
        transcendentals=0,
        bytes_accessed=(m * h_in * x_itemsize
                        + h_in * h_out_p * w_itemsize
                        + h_out_p * 4
                        + m * h_out_p * out_itemsize))

    vmem_limit = int(min(vmem_budget,
                         max(int(1.5 * tile_vmem_bytes(tm)), 16 << 20)))

    kernel = functools.partial(_seqwise_linear_kernel,
                               compute_dtype=compute_dtype)

    x_flat = x.reshape(m, h_in)          # view(t*n, -1): metadata only

    out_flat = pl.pallas_call(
        kernel,
        out_shape=jax.ShapeDtypeStruct((m, h_out_p), out_dtype),
        grid_spec=pltpu.PrefetchScalarGridSpec(
            num_scalar_prefetch=0,
            grid=grid,
            in_specs=[
                pl.BlockSpec((tm, h_in), lambda i: (i, 0)),       # x row tile
                pl.BlockSpec((h_in, h_out_p), lambda i: (0, 0)),  # W resident
                pl.BlockSpec((1, h_out_p), lambda i: (0, 0)),     # b resident
            ],
            out_specs=pl.BlockSpec((tm, h_out_p), lambda i: (i, 0)),
        ),
        compiler_params=pltpu.CompilerParams(
            dimension_semantics=("parallel",),   # row tiles are independent
            vmem_limit_bytes=vmem_limit),
        cost_estimate=cost,
    )(x_flat, w_t, b2d)

    if keep_padded or h_out_p == h_out:
        return out_flat.reshape(t, n, h_out_p)
    return out_flat[:, :h_out].reshape(t, n, h_out)
    # TODO(synk): tile K (f32 VMEM accumulator + pl.when init/finalize) once
    # resident W bytes (2 * h_in * h_out_p * w_itemsize) exceed ~16 MiB on v7x
    # (64 MiB VMEM/TC) or ~32 MiB on v5e/v6e, and tile h_out_p when
    # 2 * tm * h_out_p * out_itemsize blows the budget (large-vocab heads).


if __name__ == "__main__":
    # Small shapes implied by the forward: T=8 timesteps, N=2 batch,
    # H_in=32 -> H_out=64.
    T, N, H_IN, H_OUT = 8, 2, 32, 64

    key = jax.random.PRNGKey(0)
    kx, kw, kb = jax.random.split(key, 3)

    x = jax.random.normal(kx, (T, N, H_IN), dtype=jnp.float32)
    bound = 1.0 / (H_IN ** 0.5)
    weight = jax.random.uniform(kw, (H_OUT, H_IN), minval=-bound, maxval=bound,
                                dtype=jnp.float32)
    bias = jax.random.uniform(kb, (H_OUT,), minval=-bound, maxval=bound,
                              dtype=jnp.float32)

    # One-time parameter prep (outside the hot path).
    w_t, b2d, h_out = prepare_seqwise_linear_params(weight, bias)

    out = sequence_wise_linear(x, w_t, b2d, h_out)
    out = jax.block_until_ready(out)
    assert out.shape == (T, N, H_OUT)

    # Reference with matching bf16-input / f32-accumulate numerics.
    ref_bf = (jnp.dot(x.reshape(T * N, H_IN).astype(jnp.bfloat16),
                      weight.astype(jnp.bfloat16).T,
                      preferred_element_type=jnp.float32)
              + bias).reshape(T, N, H_OUT)
    assert jnp.allclose(out, ref_bf, atol=2e-3, rtol=2e-3)

    # Sanity check against the full-precision PyTorch-equivalent forward.
    ref_f32 = (x.reshape(T * N, H_IN) @ weight.T + bias).reshape(T, N, H_OUT)
    assert jnp.allclose(out, ref_f32, atol=3e-2, rtol=3e-2)

    # Full-precision escape hatch (compute_dtype=float32).
    w_t32, b2d32, _ = prepare_seqwise_linear_params(
        weight, bias, compute_dtype=jnp.float32)
    out_f32 = jax.block_until_ready(sequence_wise_linear(x, w_t32, b2d32, h_out))
    assert out_f32.shape == (T, N, H_OUT)
    assert jnp.allclose(out_f32, ref_f32, atol=2e-2, rtol=2e-2)

    print("KERNEL_OK")
</pallas_src>

<mosaic_0001>
module attributes {stable_mosaic.version = 11 : i64} {
  func.func @_seqwise_linear_kernel(%arg0: i32, %arg1: memref<16x32xf32, #tpu.memory_space<vmem>>, %arg2: memref<32x64xbf16, #tpu.memory_space<vmem>>, %arg3: memref<1x64xf32, #tpu.memory_space<vmem>>, %arg4: memref<16x64xf32, #tpu.memory_space<vmem>>) attributes {dimension_semantics = [#tpu.dimension_semantics<parallel>], iteration_bounds = array<i64: 1>, scalar_prefetch = 0 : i64, scratch_operands = 0 : i64, tpu.core_type = #tpu.core_type<tc>, window_params = [{transform_indices = @transform_0, window_bounds = array<i64: 16, 32>}, {pipeline_mode = #tpu.pipeline_mode<synchronous>, transform_indices = @transform_1, window_bounds = array<i64: 32, 64>}, {pipeline_mode = #tpu.pipeline_mode<synchronous>, transform_indices = @transform_2, window_bounds = array<i64: 1, 64>}, {transform_indices = @transform_3, window_bounds = array<i64: 16, 64>}]} {
    %c0 = arith.constant 0 : index
    %c0_0 = arith.constant 0 : index
    %0 = vector.load %arg1[%c0, %c0_0] : memref<16x32xf32, #tpu.memory_space<vmem>>, vector<16x32xf32>
    %1 = arith.truncf %0 : vector<16x32xf32> to vector<16x32xbf16>
    %c0_1 = arith.constant 0 : index
    %c0_2 = arith.constant 0 : index
    %2 = vector.load %arg2[%c0_1, %c0_2] : memref<32x64xbf16, #tpu.memory_space<vmem>>, vector<32x64xbf16>
    %cst = arith.constant dense<0.000000e+00> : vector<16x64xf32>
    %3 = tpu.matmul %1, %2, %cst {dimension_numbers = #tpu.dot_dimension_numbers<[1], [0], [0], [1], [0, 0, 1, 1], [], []>} : vector<16x32xbf16>, vector<32x64xbf16>, vector<16x64xf32> -> vector<16x64xf32>
    %c0_3 = arith.constant 0 : index
    %c0_4 = arith.constant 0 : index
    %4 = vector.load %arg3[%c0_3, %c0_4] : memref<1x64xf32, #tpu.memory_space<vmem>>, vector<1x64xf32>
    %5 = vector.broadcast %4 : vector<1x64xf32> to vector<16x64xf32>
    %6 = arith.addf %3, %5 : vector<16x64xf32>
    %c0_5 = arith.constant 0 : index
    %c0_6 = arith.constant 0 : index
    %7 = vector.load %arg4[%c0_5, %c0_6] : memref<16x64xf32, #tpu.memory_space<vmem>>, vector<16x64xf32>
    tpu.vector_store %arg4[%c0_5, %c0_6], %6 {strides = array<i32>} : memref<16x64xf32, #tpu.memory_space<vmem>>, vector<16x64xf32>,
    return
  }
  func.func @transform_0(%arg0: i32) -> (i32, i32) {
    %c0_i32 = arith.constant 0 : i32
    %c0_i32_0 = arith.constant 0 : i32
    return %arg0, %c0_i32 : i32, i32
  }
  func.func @transform_1(%arg0: i32) -> (i32, i32) {
    %c0_i32 = arith.constant 0 : i32
    %c0_i32_0 = arith.constant 0 : i32
    %c0_i32_1 = arith.constant 0 : i32
    return %c0_i32, %c0_i32_0 : i32, i32
  }
  func.func @transform_2(%arg0: i32) -> (i32, i32) {
    %c0_i32 = arith.constant 0 : i32
    %c0_i32_0 = arith.constant 0 : i32
    %c0_i32_1 = arith.constant 0 : i32
    return %c0_i32, %c0_i32_0 : i32, i32
  }
  func.func @transform_3(%arg0: i32) -> (i32, i32) {
    %c0_i32 = arith.constant 0 : i32
    %c0_i32_0 = arith.constant 0 : i32
    return %arg0, %c0_i32 : i32, i32
  }
}

</mosaic_0001>

<bundles_post_ra>
// kernel: tpu_custom_call.1
= control target key start
LH: loop header
LB: loop body
LE: loop exit
PB: predicated region body
PF: predicated region fallthrough
CT: control target
= control target key end

     0   :  { %8 = vsyncpa [#allocation3], 0  ;;  %s308_s0 = inlined_call_operand.hbm [shape: f32[16,32], index: 0, kind: input, shape index: {}]   ;;  %s309_s1 = inlined_call_operand.hbm [shape: bf16[32,64], index: 1, kind: input, shape index: {}]   ;;  %s310_s2 = inlined_call_operand.vmem [shape: f32[1,64], index: 2, kind: input, shape index: {}]   ;;  %s311_s3 = inlined_call_operand.hbm [shape: f32[16,64], index: 3, kind: output, shape index: {}]  }
   0x1   :  { %9 = vsyncpa [#allocation6], 0 }
   0x2   :  { %10 = vsyncpa [#allocation4], 0  ;;  %s234_s12 = smov [#allocation2]   ;;  %s162_s16 = scalar_lea.hbm %s308_s0, 256 }
   0x3   :  { %s16_s13 = sshll.u32 %s234_s12, 4  ;;  %p163_p0 = scmp.ne.s32.totalorder %s308_s0, %s162_s16  ;;  %s17_s13 = int_to_ptr.vmem [resolvable:$true] %s16_s13 }
   0x4   :  { %p166_p1 = scmp.lt.u32.totalorder %s162_s16, %s308_s0 }
   0x6   :  { %p168_p2 = pnand %p166_p1, %p163_p0 }
   0x8   :  { %171 = shalt.err (!%p168_p2)
}
   0x9   :  { %s172_s21 = scalar_lea.vmem %s17_s13, 256  ;;  %p177_p4 = scmp.lt.s32.totalorder %s17_s13, %s17_s13 }
   0xa   :  { %p173_p3 = scmp.ne.s32.totalorder %s17_s13, %s172_s21  ;;  %p178_p5 = scmp.lt.s32.totalorder %s172_s21, %s172_s21 }
   0xc   :  { %p179_p6 = por %p178_p5, %p177_p4 }
   0xe   :  { %p180_p7 = pnand %p179_p6, %p173_p3 }
  0x10   :  { %183 = shalt.err (!%p180_p7)
}
  0x11   :  { %s235_s22 = smov 128   ;;  %s236_s23 = smov 8  }
  0x12   :  { %22 = dma.hbm_to_vmem [thread:$0]  %s308_s0, 256, %s17_s13, [#allocation3], %s235_s22, %s235_s22, %s236_s23  }
  0x13   :  { %s237_s26 = smov [#allocation5]   ;;  %s184_s30 = scalar_lea.hbm %s309_s1, 256 }
  0x14   :  { %s28_s27 = sshll.u32 %s237_s26, 4  ;;  %p185_p8 = scmp.ne.s32.totalorder %s309_s1, %s184_s30  ;;  %s29_s27 = int_to_ptr.vmem [resolvable:$true] %s28_s27 }
  0x15   :  { %p188_p9 = scmp.lt.u32.totalorder %s184_s30, %s309_s1 }
  0x17   :  { %p190_p10 = pnand %p188_p9, %p185_p8 }
  0x19   :  { %193 = shalt.err (!%p190_p10)
}
  0x1a   :  { %s194_s8 = scalar_lea.vmem %s29_s27, 256  ;;  %p199_p12 = scmp.lt.s32.totalorder %s29_s27, %s29_s27 }
  0x1b   :  { %p195_p11 = scmp.ne.s32.totalorder %s29_s27, %s194_s8  ;;  %p200_p13 = scmp.lt.s32.totalorder %s194_s8, %s194_s8 }
  0x1d   :  { %p201_p0 = por %p200_p13, %p199_p12 }
  0x1f   :  { %p202_p1 = pnand %p201_p0, %p195_p11 }
  0x21   :  { %205 = shalt.err (!%p202_p1)
}
  0x22   :  { %s238_s0 = smov 64   ;;  %s239_s9 = smov 4  }
  0x23   :  { %34 = dma.hbm_to_vmem [thread:$0]  %s309_s1, 256, %s29_s27, [#allocation6], %s238_s0, %s238_s0, %s239_s9  }
  0x24   :  { %228 = dma.done.wait [#allocation3], 256  }
  0x25   :  { %229 = vsyncadd [#allocation3], 4294967040 }
  0x26   :  { %230 = dma.done.wait [#allocation6], 256  }
  0x27   :  { %231 = vsyncadd [#allocation6], 4294967040  ;;  %v240_v0 = vmov 0.0   ;;  %vm241_vm0 = vmmov 0   ;;  %v160_v1 = vld [vmem:[#allocation5] sm:$0xff]   ;;  %v161_v2 = vld [vmem:[#allocation5 + $0x8] sm:$0xff]  }
  0x28   :  { %143 = vmatprep.subr.bf16.mxu0 %v240_v0  ;;  %147 = vmatprep.mubr.msk.bf16.mxu0 %vm241_vm0, %v240_v0  ;;  %v44_v3 = vld [vmem:[#allocation2] sm:$0xff]  ;;  %v45_v4 = vld [vmem:[#allocation2 + $0x8] sm:$0xff]  ;;  %vm70_vm1 = vcmask 261120   ;;  %vm115_vm2 = vcmask 523264   ;;  %s242_s13 = smov [#allocation7]  }
  0x29   :  { %144 = vmatpush3.bf16.msra.mxu0 %v160_v1  ;;  %v46_v5 = vpack.c.bf16 %v45_v4, %v44_v3  ;;  %v136_v6 = vld [vmem:[%s310_s2] ss:$0 sm:$0xff]  ;;  %s123_s14 = sshll.u32 %s242_s13, 4  ;;  %s124_s14 = int_to_ptr.vmem [resolvable:$true] %s123_s14 }
  0x2a   :  { %145 = vmatprep.subr.bf16.mxu0 %v240_v0  ;;  %s206_s15 = scalar_lea.vmem %s124_s14, 256  ;;  %p211_p3 = scmp.lt.s32.totalorder %s124_s14, %s124_s14 }
  0x2b   :  { %p207_p2 = scmp.ne.s32.totalorder %s124_s14, %s206_s15  ;;  %p212_p4 = scmp.lt.s32.totalorder %s206_s15, %s206_s15 }
  0x2d   :  { %146 = vmatpush3.bf16.msra.mxu0 %v161_v2  ;;  %p213_p5 = por %p212_p4, %p211_p3 }
  0x2f   :  { %p214_p6 = pnand %p213_p5, %p207_p2 }
  0x30   :  { %148 = vmatmul.mubr.msk.bf16.vlgmr.msra.gmra.mrb[0].mxu0 %vm70_vm1, %v46_v5 }
 0x103   :  { %v108_v7 = vpop.f32.mrb[0].mxu0 }
 0x104   :  { %v109_v8 = vadd.f32 %v136_v6, %v108_v7  ;;  %v149_v9 = vpop.f32.mrb[1].mxu0 }
 0x105   :  { %v111_v10 = vpop.f32.mrb[2].mxu0 }
 0x106   :  { %v112_v11 = vadd.f32 %v136_v6, %v111_v10  ;;  %v150_v12 = vpop.f32.mrb[3].mxu0  ;;  %116 = vst.msk [vmem:[#allocation7] sm:$0xff] %vm115_vm2, %v109_v8 }
 0x108   :  { %117 = vst.msk [vmem:[#allocation7 + $0x8] sm:$0xff] %vm115_vm2, %v112_v11 }
 0x109   :  { %217 = shalt.err (!%p214_p6)
}
 0x10a   :  { %s218_s17 = scalar_lea.hbm %s311_s3, 256 }
 0x10b   :  { %p219_p7 = scmp.ne.s32.totalorder %s311_s3, %s218_s17  ;;  %p222_p8 = scmp.lt.u32.totalorder %s218_s17, %s311_s3 }
 0x10d   :  { %p224_p9 = pnand %p222_p8, %p219_p7 }
 0x10f   :  { %227 = shalt.err (!%p224_p9)
}
 0x110   :  { %129 = dma.vmem_to_hbm [thread:$0]  %s124_s14, 256, %s311_s3, [#allocation4], %s235_s22, %s235_s22, %s236_s23  }
 0x111   :  { %232 = dma.done.wait [#allocation4], 256  }
 0x112   :  { %233 = vsyncadd [#allocation4], 4294967040 }
 0x113   :  { %133 = vsyncpa [#allocation3], 1 }
 0x114   :  { %134 = vsyncpa [#allocation6], 1 }
 0x115   :  { %135 = vsyncpa [#allocation4], 1 }

</bundles_post_ra>
